<compile_context>
chip_gen: v6e
topology: v6e:2x2x1
jax: 0.10.0
libtpu: 0.0.40
codegen_flags: <defaults>
</compile_context>

<pallas_src>
import jax
import jax.numpy as jnp
from jax.experimental import pallas as pl
from jax.experimental.pallas import tpu as pltpu


def _fused_heads_kernel(x_ref, w_ref, b_ref, o_ref):
    """One packed matmul over the [F, 4*O] slab.

    grid = (M tiles, N tiles, K tiles); K (reduction) is LAST / "arbitrary"
    and the output BlockSpec ignores k, so o_ref is resident across K and is
    used directly as the f32 accumulator.
    """
    k = pl.program_id(2)  # hoisted: never call pl.program_id inside pl.when

    @pl.when(k == 0)
    def _():
        # Initialize the resident output block with the broadcast bias
        # (the +1 of PlusOneWrapper is already folded into head-1's bias).
        o_ref[...] = jnp.broadcast_to(b_ref[...], o_ref.shape)

    # bf16 x bf16 -> f32 accumulation on the MXU, straight into the output.
    o_ref[...] += jnp.dot(
        x_ref[...], w_ref[...], preferred_element_type=jnp.float32
    )


def _round_up(x, m):
    return (x + m - 1) // m * m


def _tile(dim, align, target):
    """Aligned tile: the aligned-up full dim when small, else `target`."""
    if dim <= target:
        return _round_up(dim, align)
    return target  # target is a multiple of `align`


def _pad_to(arr, shape):
    pads = [(0, s - d) for d, s in zip(arr.shape, shape)]
    if any(p[1] for p in pads):
        return jnp.pad(arr, pads)
    return arr


def pack_heads(params):
    """One-time (offline) packing of the four heads into a single slab.

    The PlusOneWrapper "+1" is folded into head 1's bias here, so the kernel
    epilogue is a plain bias add with zero extra VPU work.
    """
    w_packed = jnp.concatenate(
        [params["w1"], params["w2"], params["w3"], params["w4"]], axis=1
    ).astype(jnp.bfloat16)
    b_packed = jnp.concatenate(
        [params["b1"] + 1.0, params["b2"], params["b3"], params["b4"]], axis=1
    ).astype(jnp.float32)
    return w_packed, b_packed


def plus_one_wrapper(x, w_packed, b_packed, head_width):
    """x: [B, F].  w_packed: [F, 4*O] bf16.  b_packed: [1, 4*O] f32."""
    B, F = x.shape
    Fw, N = w_packed.shape
    assert Fw == F and b_packed.shape == (1, N)

    x = x.astype(jnp.bfloat16)

    # Cross-generation defaults: tm mult of 16 (bf16 sublanes), tn/tk mult of
    # 128 (lanes / v5e MXU); 512 targets fit comfortably under 48 MiB VMEM
    # with double buffering on all of v5e/v6e/v7x.  (On v6e, 1024-wide tn/tk
    # is also viable given its 128 MiB VMEM.)
    tm = _tile(B, 16, 256)
    tn = _tile(N, 128, 512)
    tk = _tile(F, 128, 512)

    Bp = _round_up(B, tm)
    Np = _round_up(N, tn)
    Fp = _round_up(F, tk)

    # v7x has 2 TensorCores: if the (M, N) parallel grid is a single tile,
    # split N so the second core gets work (harmless on 1-TC v5e/v6e).
    if (Bp // tm) * (Np // tn) == 1 and tn >= 256 and tn % 256 == 0:
        tn //= 2

    x_p = _pad_to(x, (Bp, Fp))
    w_p = _pad_to(w_packed, (Fp, Np))
    b_p = _pad_to(b_packed, (1, Np))

    grid = (Bp // tm, Np // tn, Fp // tk)

    packed = pl.pallas_call(
        _fused_heads_kernel,
        out_shape=jax.ShapeDtypeStruct((Bp, Np), jnp.float32),
        grid_spec=pltpu.PrefetchScalarGridSpec(
            num_scalar_prefetch=0,
            grid=grid,
            in_specs=[
                pl.BlockSpec((tm, tk), lambda i, j, k: (i, k)),  # x (bf16)
                pl.BlockSpec((tk, tn), lambda i, j, k: (k, j)),  # packed W (bf16)
                pl.BlockSpec((1, tn), lambda i, j, k: (0, j)),   # packed bias (f32)
            ],
            out_specs=pl.BlockSpec((tm, tn), lambda i, j, k: (i, j)),
        ),
        compiler_params=pltpu.CompilerParams(
            # K innermost must stay "arbitrary" (output accumulates across it).
            dimension_semantics=("parallel", "parallel", "arbitrary"),
            vmem_limit_bytes=48 * 1024 * 1024,  # > scoped defaults, < v7x 64 MiB
        ),
    )(x_p, w_p, b_p)

    packed = packed[:B, :N]
    O = head_width
    # NOTE: downstream kernels should prefer the lane-dense packed [B, 4*O]
    # slab; the per-head slices below only exist to match the module's
    # 4-tensor return signature.
    return (
        packed[:, :O],
        packed[:, O : 2 * O],
        packed[:, 2 * O : 3 * O],
        packed[:, 3 * O :],
    )


def _reference(x, params):
    """Pure-JAX reference of PlusOneWrapper over the synthetic 4-head module
    (same bf16 weight/activation cast, f32 accumulation)."""
    x_bf = x.astype(jnp.bfloat16)

    def head(i):
        w = params[f"w{i}"].astype(jnp.bfloat16)
        b = params[f"b{i}"]
        return jnp.dot(x_bf, w, preferred_element_type=jnp.float32) + b

    r1, r2, r3, r4 = head(1), head(2), head(3), head(4)
    return (r1 + 1.0, r2, r3, r4)


if __name__ == "__main__":
    key = jax.random.PRNGKey(0)
    B, F, O = 8, 32, 32  # packed output width 4*O = 128 lanes (one vreg row)

    k_x, *k_ws = jax.random.split(key, 1 + 8)
    x = jax.random.normal(k_x, (B, F), dtype=jnp.float32)

    params = {}
    for i in range(4):
        params[f"w{i + 1}"] = (
            jax.random.normal(k_ws[2 * i], (F, O), dtype=jnp.float32) * 0.1
        )
        params[f"b{i + 1}"] = (
            jax.random.normal(k_ws[2 * i + 1], (1, O), dtype=jnp.float32) * 0.1
        )

    # TODO(synk): the wrapped module is an injected dependency in the original
    # code; a 4-head linear stand-in is used here so the wrapper has something
    # concrete to fuse with.
    w_packed, b_packed = pack_heads(params)

    outs = plus_one_wrapper(x, w_packed, b_packed, head_width=O)
    outs = jax.block_until_ready(outs)

    refs = _reference(x, params)
    for o, r in zip(outs, refs):
        assert o.shape == r.shape and o.dtype == r.dtype
        assert jnp.allclose(o, r, atol=1e-4, rtol=1e-4)

    print("KERNEL_OK")
</pallas_src>

<mosaic_0001>
module attributes {stable_mosaic.version = 11 : i64} {
  func.func @_fused_heads_kernel(%arg0: i32, %arg1: i32, %arg2: i32, %arg3: memref<16x128xbf16, #tpu.memory_space<vmem>>, %arg4: memref<128x128xbf16, #tpu.memory_space<vmem>>, %arg5: memref<1x128xf32, #tpu.memory_space<vmem>>, %arg6: memref<16x128xf32, #tpu.memory_space<vmem>>) attributes {dimension_semantics = [#tpu.dimension_semantics<parallel>, #tpu.dimension_semantics<parallel>, #tpu.dimension_semantics<arbitrary>], iteration_bounds = array<i64: 1, 1, 1>, scalar_prefetch = 0 : i64, scratch_operands = 0 : i64, tpu.core_type = #tpu.core_type<tc>, window_params = [{transform_indices = @transform_0, window_bounds = array<i64: 16, 128>}, {transform_indices = @transform_1, window_bounds = array<i64: 128, 128>}, {transform_indices = @transform_2, window_bounds = array<i64: 1, 128>}, {transform_indices = @transform_3, window_bounds = array<i64: 16, 128>}]} {
    %c0_i32 = arith.constant 0 : i32
    %0 = arith.cmpi eq, %arg2, %c0_i32 : i32
    %1 = arith.extui %0 : i1 to i32
    %c0_i32_0 = arith.constant 0 : i32
    %2 = arith.cmpi ne, %1, %c0_i32_0 : i32
    scf.if %2 {
      %c0_8 = arith.constant 0 : index
      %c0_9 = arith.constant 0 : index
      %9 = vector.load %arg5[%c0_8, %c0_9] : memref<1x128xf32, #tpu.memory_space<vmem>>, vector<1x128xf32>
      %10 = vector.shape_cast %9 : vector<1x128xf32> to vector<1x128xf32>
      %11 = vector.broadcast %10 : vector<1x128xf32> to vector<16x128xf32>
      %c0_10 = arith.constant 0 : index
      %c0_11 = arith.constant 0 : index
      %12 = vector.load %arg6[%c0_10, %c0_11] : memref<16x128xf32, #tpu.memory_space<vmem>>, vector<16x128xf32>
      tpu.vector_store %arg6[%c0_10, %c0_11], %11 {strides = array<i32>} : memref<16x128xf32, #tpu.memory_space<vmem>>, vector<16x128xf32>,
    } else {
    }
    %c0 = arith.constant 0 : index
    %c0_1 = arith.constant 0 : index
    %3 = vector.load %arg6[%c0, %c0_1] : memref<16x128xf32, #tpu.memory_space<vmem>>, vector<16x128xf32>
    %c0_2 = arith.constant 0 : index
    %c0_3 = arith.constant 0 : index
    %4 = vector.load %arg3[%c0_2, %c0_3] : memref<16x128xbf16, #tpu.memory_space<vmem>>, vector<16x128xbf16>
    %c0_4 = arith.constant 0 : index
    %c0_5 = arith.constant 0 : index
    %5 = vector.load %arg4[%c0_4, %c0_5] : memref<128x128xbf16, #tpu.memory_space<vmem>>, vector<128x128xbf16>
    %cst = arith.constant dense<0.000000e+00> : vector<16x128xf32>
    %6 = tpu.matmul %4, %5, %cst {dimension_numbers = #tpu.dot_dimension_numbers<[1], [0], [0], [1], [0, 0, 1, 1], [], []>} : vector<16x128xbf16>, vector<128x128xbf16>, vector<16x128xf32> -> vector<16x128xf32>
    %7 = arith.addf %3, %6 : vector<16x128xf32>
    %c0_6 = arith.constant 0 : index
    %c0_7 = arith.constant 0 : index
    %8 = vector.load %arg6[%c0_6, %c0_7] : memref<16x128xf32, #tpu.memory_space<vmem>>, vector<16x128xf32>
    tpu.vector_store %arg6[%c0_6, %c0_7], %7 {strides = array<i32>} : memref<16x128xf32, #tpu.memory_space<vmem>>, vector<16x128xf32>,
    return
  }
  func.func @transform_0(%arg0: i32, %arg1: i32, %arg2: i32) -> (i32, i32) {
    %c0_i32 = arith.constant 0 : i32
    return %arg0, %arg2 : i32, i32
  }
  func.func @transform_1(%arg0: i32, %arg1: i32, %arg2: i32) -> (i32, i32) {
    %c0_i32 = arith.constant 0 : i32
    return %arg2, %arg1 : i32, i32
  }
  func.func @transform_2(%arg0: i32, %arg1: i32, %arg2: i32) -> (i32, i32) {
    %c0_i32 = arith.constant 0 : i32
    %c0_i32_0 = arith.constant 0 : i32
    return %c0_i32, %arg1 : i32, i32
  }
  func.func @transform_3(%arg0: i32, %arg1: i32, %arg2: i32) -> (i32, i32) {
    %c0_i32 = arith.constant 0 : i32
    return %arg0, %arg1 : i32, i32
  }
}

</mosaic_0001>

<bundles_post_ra>
// kernel: tpu_custom_call.1
= control target key start
LH: loop header
LB: loop body
LE: loop exit
PB: predicated region body
PF: predicated region fallthrough
CT: control target
= control target key end

     0   :  { %8 = vsyncpa [#allocation3], 0  ;;  %s358_s0 = inlined_call_operand.hbm [shape: bf16[16,128], index: 0, kind: input, shape index: {}]   ;;  %s359_s1 = inlined_call_operand.hbm [shape: bf16[128,128], index: 1, kind: input, shape index: {}]   ;;  %s360_s2 = inlined_call_operand.vmem [shape: f32[1,128], index: 2, kind: input, shape index: {}]   ;;  %s361_s3 = inlined_call_operand.hbm [shape: f32[16,128], index: 3, kind: output, shape index: {}]  }
   0x1   :  { %9 = vsyncpa [#allocation6], 0 }
   0x2   :  { %10 = vsyncpa [#allocation4], 0  ;;  %s317_s12 = smov [#allocation2]  }
   0x3   :  { %s16_s13 = sshll.u32 %s317_s12, 4  ;;  %s17_s13 = int_to_ptr.vmem [resolvable:$true] %s16_s13 }
   0x4   :  { %s259_s14 = scalar_lea.vmem %s17_s13, 128  ;;  %p264_p1 = scmp.lt.s32.totalorder %s17_s13, %s17_s13 }
   0x5   :  { %p260_p0 = scmp.ne.s32.totalorder %s17_s13, %s259_s14  ;;  %p265_p2 = scmp.lt.s32.totalorder %s259_s14, %s259_s14 }
   0x7   :  { %p266_p3 = por %p265_p2, %p264_p1 }
   0x9   :  { %p267_p4 = pnand %p266_p3, %p260_p0 }
   0xb   :  { %270 = shalt.err (!%p267_p4)
}
   0xc   :  { %s318_s15 = smov 64   ;;  %s319_s16 = smov 4  }
   0xd   :  { %22 = dma.hbm_to_vmem [thread:$0]  %s358_s0, 128, %s17_s13, [#allocation3], %s318_s15, %s318_s15, %s319_s16  }
   0xe   :  { %s320_s19 = smov [#allocation5]  }
   0xf   :  { %s28_s20 = sshll.u32 %s320_s19, 4  ;;  %s29_s20 = int_to_ptr.vmem [resolvable:$true] %s28_s20 }
  0x10   :  { %s279_s21 = scalar_lea.vmem %s29_s20, 1024  ;;  %p284_p6 = scmp.lt.s32.totalorder %s29_s20, %s29_s20 }
  0x11   :  { %p280_p5 = scmp.ne.s32.totalorder %s29_s20, %s279_s21  ;;  %p285_p7 = scmp.lt.s32.totalorder %s279_s21, %s279_s21 }
  0x13   :  { %p286_p8 = por %p285_p7, %p284_p6 }
  0x15   :  { %p287_p9 = pnand %p286_p8, %p280_p5 }
  0x17   :  { %290 = shalt.err (!%p287_p9)
}
  0x18   :  { %34 = dma.hbm_to_vmem [thread:$0]  %s359_s1, 1024, %s29_s20, [#allocation6], %s318_s15, %s318_s15, %s319_s16  }
  0x19   :  { %311 = dma.done.wait [#allocation3], 128  }
  0x1a   :  { %312 = vsyncadd [#allocation3], 4294967168 }
  0x1b   :  { %313 = dma.done.wait [#allocation6], 1024  }
  0x1c   :  { %314 = vsyncadd [#allocation6], 4294966272  ;;  %v321_v0 = vmov 0.0   ;;  %vm322_vm0 = vmmov 0   ;;  %v242_v1 = vld [vmem:[#allocation5 + $0x38] sm:$0xff]   ;;  %v243_v2 = vld [vmem:[#allocation5 + $0x30] sm:$0xff]  }
  0x1d   :  { %213 = vmatprep.subr.bf16.mxu0 %v321_v0  ;;  %229 = vmatprep.mubr.msk.bf16.mxu0 %vm322_vm0, %v321_v0  ;;  %v244_v3 = vld [vmem:[#allocation5 + $0x28] sm:$0xff]   ;;  %v245_v4 = vld [vmem:[#allocation5 + $0x20] sm:$0xff]   ;;  %v246_v5 = vld [vmem:[#allocation5 + $0x18] sm:$0xff]   ;;  %s323_s24 = smov [#allocation7]  }
  0x1e   :  { %214 = vmatpush3.bf16.msra.mxu0 %v242_v1  ;;  %v247_v6 = vld [vmem:[#allocation5 + $0x10] sm:$0xff]   ;;  %v248_v7 = vld [vmem:[#allocation5 + $0x8] sm:$0xff]   ;;  %v249_v8 = vld [vmem:[#allocation5] sm:$0xff]   ;;  %s181_s25 = sshll.u32 %s323_s24, 4  ;;  %s182_s25 = int_to_ptr.vmem [resolvable:$true] %s181_s25 }
  0x1f   :  { %215 = vmatprep.subr.bf16.mxu0 %v321_v0  ;;  %v250_v9 = vld [vmem:[#allocation2] sm:$0xff]   ;;  %s291_s26 = scalar_lea.vmem %s182_s25, 256  ;;  %p296_p11 = scmp.lt.s32.totalorder %s182_s25, %s182_s25 }
  0x20   :  { %v194_v10 = vld [vmem:[%s360_s2] ss:$0 sm:$0xff]  ;;  %p292_p10 = scmp.ne.s32.totalorder %s182_s25, %s291_s26  ;;  %p297_p12 = scmp.lt.s32.totalorder %s291_s26, %s291_s26 }
  0x22   :  { %216 = vmatpush3.bf16.msra.mxu0 %v243_v2  ;;  %p298_p13 = por %p297_p12, %p296_p11 }
  0x23   :  { %217 = vmatprep.subr.bf16.mxu0 %v321_v0 }
  0x24   :  { %p299_p0 = pnand %p298_p13, %p292_p10 }
  0x26   :  { %218 = vmatpush3.bf16.msra.mxu0 %v244_v3 }
  0x27   :  { %219 = vmatprep.subr.bf16.mxu0 %v321_v0 }
  0x2a   :  { %220 = vmatpush3.bf16.msra.mxu0 %v245_v4 }
  0x2b   :  { %221 = vmatprep.subr.bf16.mxu0 %v321_v0 }
  0x2e   :  { %222 = vmatpush3.bf16.msra.mxu0 %v246_v5 }
  0x2f   :  { %223 = vmatprep.subr.bf16.mxu0 %v321_v0 }
  0x32   :  { %224 = vmatpush3.bf16.msra.mxu0 %v247_v6 }
  0x33   :  { %225 = vmatprep.subr.bf16.mxu0 %v321_v0 }
  0x36   :  { %226 = vmatpush3.bf16.msra.mxu0 %v248_v7 }
  0x37   :  { %227 = vmatprep.subr.bf16.mxu0 %v321_v0 }
  0x3a   :  { %228 = vmatpush3.bf16.msra.mxu0 %v249_v8 }
  0x3d   :  { %230 = vmatmul.mubr.bf16.vlgmr.msra.gmra.mxu0 %v250_v9 }
  0xfd   :  { %v165_v11 = vpop.f32.mrf.mxu0 }
  0xfe   :  { %v172_v12 = vadd.f32 %v194_v10, %v165_v11 }
  0xff   :  { %v231_v13 = vpop.f32.mrf.mxu0 }
 0x100   :  { %174 = vst [vmem:[#allocation7] sm:$0xff] %v172_v12 }
 0x101   :  { %v168_v14 = vpop.f32.mrf.mxu0 }
 0x102   :  { %v173_v15 = vadd.f32 %v194_v10, %v168_v14 }
 0x103   :  { %v232_v16 = vpop.f32.mrf.mxu0 }
 0x104   :  { %175 = vst [vmem:[#allocation7 + $0x8] sm:$0xff] %v173_v15 }
 0x105   :  { %302 = shalt.err (!%p299_p0)
}
 0x106   :  { %s324_s27 = smov 128   ;;  %s325_s2 = smov 8  }
 0x107   :  { %187 = dma.vmem_to_hbm [thread:$0]  %s182_s25, 256, %s361_s3, [#allocation4], %s324_s27, %s324_s27, %s325_s2  }
 0x108   :  { %315 = dma.done.wait [#allocation4], 256  }
 0x109   :  { %316 = vsyncadd [#allocation4], 4294967040 }
 0x10a   :  { %191 = vsyncpa [#allocation3], 1 }
 0x10b   :  { %192 = vsyncpa [#allocation6], 1 }
 0x10c   :  { %193 = vsyncpa [#allocation4], 1 }

</bundles_post_ra>
